<compile_context>
chip_gen: v6e
topology: v6e:2x2x1
jax: 0.10.0
libtpu: 0.0.40
codegen_flags: <defaults>
</compile_context>

<pallas_src>
import math
from functools import partial

import jax
import jax.numpy as jnp
from jax.experimental import pallas as pl
from jax.experimental.pallas import tpu as pltpu


_LANE = 128  # TPU lane width; feature axis is padded to a multiple of this.


def _round_up(x: int, m: int) -> int:
    return ((x + m - 1) // m) * m


def _scatter_rows_kernel(off_ref, x_ref, buf_ref, out_ref, sem_ref):
    """Write x (n rows, already in VMEM) into out[off : off + n, :] in HBM.

    `buf_ref` is the same HBM buffer as `out_ref` (input_output_aliases), so
    rows outside [off, off+n) keep their previous contents; only the n new
    rows ever move.
    """
    del buf_ref  # aliased with out_ref; never read
    n = x_ref.shape[0]  # static
    # TODO(synk): when the calling pattern guarantees sublane-aligned offsets,
    # wrap the start in pl.multiple_of(off_ref[0], 8) to hint an aligned DMA.
    copy = pltpu.make_async_copy(
        x_ref,
        out_ref.at[pl.ds(off_ref[0], n), :],
        sem_ref,
    )
    copy.start()
    copy.wait()


@partial(jax.jit, donate_argnums=(2,))
def _scatter_rows(off, x2d, buf2d):
    """Return buf2d with buf2d[off:off+n, :] = x2d, updated in place."""
    n, r = x2d.shape
    cap, rb = buf2d.shape
    assert r == rb and r % _LANE == 0, (r, rb)
    return pl.pallas_call(
        _scatter_rows_kernel,
        out_shape=jax.ShapeDtypeStruct(buf2d.shape, buf2d.dtype),
        in_specs=[
            pl.BlockSpec(memory_space=pltpu.MemorySpace.SMEM),  # row offset
            pl.BlockSpec(memory_space=pltpu.MemorySpace.VMEM),  # incoming rows
            pl.BlockSpec(memory_space=pl.ANY),                  # buffer (HBM)
        ],
        out_specs=pl.BlockSpec(memory_space=pl.ANY),            # same HBM buffer
        scratch_shapes=[pltpu.SemaphoreType.DMA],
        input_output_aliases={2: 0},                            # buf2d -> out
        compiler_params=pltpu.CompilerParams(has_side_effects=True),
    )(off, x2d, buf2d)


class ConcatTensor:
    """JAX/Pallas re-implementation of modfire.utils.ConcatTensor."""

    _DEFAULT_INCREASE = 2048

    def __init__(self, dim: int = 0):
        self._dim = dim
        self.reset()

    def reset(self):
        self._length = -1
        self._buffer = None        # internal 2-D buffer [capacity, r_padded]
        self._rest_shape = None    # original shape with `dim` removed
        self._row_width = None     # prod(rest) before lane padding

    def seek(self, idx: int):
        self._length = idx + 1

    @property
    def Value(self) -> jax.Array:
        rows = self._buffer[: self._length, : self._row_width]
        out = rows.reshape((self._length,) + self._rest_shape)
        return jnp.moveaxis(out, 0, self._dim)

    def forward(self, x: jax.Array):
        x = jnp.asarray(x)
        dim = self._dim
        n = x.shape[dim]
        rest_shape = tuple(s for i, s in enumerate(x.shape) if i != dim)

        # concat dim to front, flatten the rest, lane-pad the feature axis.
        x2d = jnp.moveaxis(x, dim, 0).reshape(n, -1)
        r = x2d.shape[1]
        r_pad = _round_up(max(r, 1), _LANE)
        if r_pad != r:
            x2d = jnp.pad(x2d, ((0, 0), (0, r_pad - r)))

        if self._length < 0:
            cap = _round_up(n, self._DEFAULT_INCREASE)
            # torch.empty contents are undefined; zeros is an equivalent choice.
            self._buffer = jnp.zeros((cap, r_pad), dtype=x.dtype)
            self._rest_shape = rest_shape
            self._row_width = r
            offset = 0
        else:
            offset = self._length
            cap = self._buffer.shape[0]
            if offset + n > cap:
                # Rare growth path: geometric doubling amortizes the copy.
                new_cap = max(2 * cap, _round_up(offset + n, self._DEFAULT_INCREASE))
                extra = jnp.zeros((new_cap - cap, r_pad), dtype=self._buffer.dtype)
                self._buffer = jnp.concatenate([self._buffer, extra], axis=0)

        off = jnp.asarray([offset], dtype=jnp.int32)
        self._buffer = _scatter_rows(off, x2d, self._buffer)
        self._length = offset + n
        # PyTorch forward returns None (result observed via .Value)
        return None

    __call__ = forward


if __name__ == "__main__":
    key = jax.random.PRNGKey(0)
    k1, k2, k3, k4, k5, k6 = jax.random.split(key, 6)

    # --- test 1: f32, dim=0, two chunks of [8, 32] ---
    x1 = jax.random.normal(k1, (8, 32), dtype=jnp.float32)
    x2 = jax.random.normal(k2, (8, 32), dtype=jnp.float32)
    ct = ConcatTensor(dim=0)
    ct(x1)
    ct(x2)
    val = jax.block_until_ready(ct.Value)
    ref = jnp.concatenate([x1, x2], axis=0)
    assert val.shape == ref.shape, val.shape
    assert jnp.array_equal(val, ref), "dim=0 f32 mismatch"

    # --- test 2: f32, concat along dim=1 of a 3-D tensor [4, 8, 16] ---
    y1 = jax.random.normal(k3, (4, 8, 16), dtype=jnp.float32)
    y2 = jax.random.normal(k4, (4, 8, 16), dtype=jnp.float32)
    ct1 = ConcatTensor(dim=1)
    ct1(y1)
    ct1(y2)
    val1 = jax.block_until_ready(ct1.Value)
    ref1 = jnp.concatenate([y1, y2], axis=1)
    assert val1.shape == ref1.shape, val1.shape
    assert jnp.array_equal(val1, ref1), "dim=1 f32 mismatch"

    # --- test 3: bf16 buffer, packing-aligned 16-row chunks of [16, 32] ---
    w1 = jax.random.normal(k5, (16, 32), dtype=jnp.bfloat16)
    w2 = jax.random.normal(k6, (16, 32), dtype=jnp.bfloat16)
    ct2 = ConcatTensor(dim=0)
    ct2(w1)
    ct2(w2)
    val2 = jax.block_until_ready(ct2.Value)
    ref2 = jnp.concatenate([w1, w2], axis=0)
    assert val2.shape == ref2.shape, val2.shape
    assert jnp.array_equal(val2, ref2), "bf16 mismatch"

    print("KERNEL_OK")
</pallas_src>

<mosaic_0001>
module attributes {stable_mosaic.version = 11 : i64} {
  func.func @_scatter_rows_kernel(%arg0: memref<1xi32, #tpu.memory_space<smem>>, %arg1: memref<8x128xf32, #tpu.memory_space<vmem>>, %arg2: memref<2048x128xf32, #tpu.memory_space<any>>, %arg3: memref<2048x128xf32, #tpu.memory_space<any>>, %arg4: memref<!tpu.dma_semaphore, #tpu.memory_space<semaphore_mem>>) attributes {dimension_semantics = [], scalar_prefetch = 0 : i64, scratch_operands = 1 : i64, tpu.core_type = #tpu.core_type<tc>} {
    %c0 = arith.constant 0 : index
    %0 = memref.load %arg0[%c0] : memref<1xi32, #tpu.memory_space<smem>>
    %c0_i32 = arith.constant 0 : i32
    %1 = tpu.memref_slice %arg3[%0, %c0_i32] : memref<2048x128xf32, #tpu.memory_space<any>> -> memref<8x128xf32, #tpu.memory_space<any>>
    tpu.enqueue_dma source(%arg1 : memref<8x128xf32, #tpu.memory_space<vmem>>) target(%1 : memref<8x128xf32, #tpu.memory_space<any>>) target_semaphore(%arg4 : memref<!tpu.dma_semaphore, #tpu.memory_space<semaphore_mem>>)
    %c0_i32_0 = arith.constant 0 : i32
    %2 = tpu.memref_slice %arg3[%0, %c0_i32_0] : memref<2048x128xf32, #tpu.memory_space<any>> -> memref<8x128xf32, #tpu.memory_space<any>>
    tpu.wait_dma2 semaphore(%arg4 : memref<!tpu.dma_semaphore, #tpu.memory_space<semaphore_mem>>) src(%arg1 : memref<8x128xf32, #tpu.memory_space<vmem>>) dst(%2 : memref<8x128xf32, #tpu.memory_space<any>>)
    return
  }
}

</mosaic_0001>

<bundles_post_ra>
// kernel: _scatter_rows.1
= control target key start
LH: loop header
LB: loop body
LE: loop exit
PB: predicated region body
PF: predicated region fallthrough
CT: control target
= control target key end

     0   :  { %9 = vsyncpa [#allocation5], 0  ;;  %s100_s12 = smov [#allocation4]   ;;  %s136_s0 = inlined_call_operand.<no memory space> [shape: s32[1], index: 0, kind: input, shape index: {}]   ;;  %s137_s1 = inlined_call_operand.hbm [shape: f32[8,128], index: 1, kind: input, shape index: {}]   ;;  %s138_s2 = inlined_call_operand.hbm [shape: f32[2048,128], index: 2, kind: input, shape index: {}, may-alias: {2,3}]   ;;  %s139_s3 = inlined_call_operand.hbm [shape: f32[2048,128], index: 3, kind: output, shape index: {}, may-alias: {2,3}]  }
   0x1   :  { %s18_s13 = sshll.u32 %s100_s12, 4  ;;  %s19_s13 = int_to_ptr.vmem [resolvable:$true] %s18_s13 }
   0x2   :  { %s62_s14 = scalar_lea.vmem %s19_s13, 128  ;;  %p67_p1 = scmp.lt.s32.totalorder %s19_s13, %s19_s13 }
   0x3   :  { %p63_p0 = scmp.ne.s32.totalorder %s19_s13, %s62_s14  ;;  %p68_p2 = scmp.lt.s32.totalorder %s62_s14, %s62_s14 }
   0x5   :  { %p69_p3 = por %p68_p2, %p67_p1 }
   0x7   :  { %p70_p4 = pnand %p69_p3, %p63_p0 }
   0x9   :  { %73 = shalt.err (!%p70_p4)
}
   0xa   :  { %21 = dma.hbm_to_vmem [thread:$0]  %s137_s1, 128, %s19_s13, [#allocation5]  }
   0xb   :  { %96 = dma.done.wait [#allocation5], 128  }
   0xc   :  { %97 = vsyncadd [#allocation5], 4294967168  ;;  %s51_s18 = sshll.u32 %s136_s0, 4 }
   0xd   :  { %s27_s21 = scalar_lea.hbm %s139_s3, %s51_s18 }
   0xe   :  { %85 = shalt.err (!%p70_p4)  }
   0xf   :  { %s86_s22 = scalar_lea.hbm %s27_s21, 128  ;;  %s88_s25 = scalar_lea.hbm %s139_s3, 32768 }
  0x10   :  { %p87_p5 = scmp.ne.s32.totalorder %s27_s21, %s86_s22  ;;  %p89_p6 = scmp.lt.s32.totalorder %s27_s21, %s139_s3 }
  0x11   :  { %p90_p7 = scmp.lt.s32.totalorder %s88_s25, %s86_s22 }
  0x13   :  { %p91_p8 = por %p90_p7, %p89_p6 }
  0x15   :  { %p92_p9 = pnand %p91_p8, %p87_p5 }
  0x17   :  { %95 = shalt.err (!%p92_p9)  }
  0x18   :  { %38 = dma.vmem_to_hbm [thread:$0]  %s19_s13, 128, %s27_s21, [#allocation2] }
  0x19   :  { %98 = dma.done.wait [#allocation2], 128 }
  0x1a   :  { %99 = vsyncadd [#allocation2], 4294967168 }
  0x1b   :  { %42 = vsyncpa [#allocation5], 1 }
  0x1c   :  { %43 = vsyncmov [#allocation2] }
  0x1f   :  { %s44_s0 = vpop.sfrf %43 }
  0x20   :  { %p52_p10 = scmp.ne.s32.totalorder %s44_s0, 0 }
  0x22   :  { %48 = shalt.err (%p52_p10)  }

</bundles_post_ra>
